<compile_context>
chip_gen: v7x
topology: tpu7x:2x2x1
jax: 0.10.0
libtpu: 0.0.40
codegen_flags: <defaults>
</compile_context>

<pallas_src>
import jax
import jax.numpy as jnp
from jax.experimental import pallas as pl
from jax.experimental.pallas import tpu as pltpu

LANE = 128          # TPU vreg lane width
CHUNK = 512         # in-kernel sub-tile of the lane (batch) axis; multiple of 256
MIN_GRID_STEPS = 8  # target >= 3-4 grid steps per TensorCore on v7x's two cores


def mlp_kernel(x_ref, w1_ref, b1_ref, w2_ref, b2_ref, w3_ref, b3_ref, o_ref):
    """Batch-in-lanes: x block is (11, TN); every matmul output is lane-dense."""
    tn = x_ref.shape[1]
    chunk = min(CHUNK, tn)          # tn is a multiple of chunk by construction
    n_chunks = tn // chunk

    # Weights / biases are tiny and shared by every chunk; load once per step.
    # Their block index is constant across the grid, so Pallas only DMAs them
    # on the first step (the second pipeline buffer simply sits idle).
    # TODO(synk): pipeline_mode=pl.Buffered(1) on the weight specs would trim
    # ~30 KiB of that idle double-buffer VMEM; skipped for lowering portability.
    w1 = w1_ref[...]
    b1 = b1_ref[...]
    w2 = w2_ref[...]
    b2 = b2_ref[...]
    w3 = w3_ref[...]
    b3 = b3_ref[...]
    cdt = w1.dtype  # MXU-input dtype (float32 or bfloat16); accumulation is f32

    # Static unrolled loop over lane sub-chunks: h1 (128, chunk) stays near the
    # vreg file instead of spilling a full (128, tn) temp to VMEM, and chunk
    # i+1's layer-1 MXU passes can overlap chunk i's VPU ReLU / layer-2 work.
    for c in range(n_chunks):
        off = c * chunk                                   # static, multiple of 128
        x = x_ref[:, pl.ds(off, chunk)]                   # (11, chunk)
        h1 = jnp.dot(w1, x, preferred_element_type=jnp.float32) + b1
        h1 = jnp.maximum(h1, 0.0)                         # (128, chunk) f32
        h2 = jnp.dot(w2, h1.astype(cdt), preferred_element_type=jnp.float32) + b2
        h2 = jnp.maximum(h2, 0.0)                         # (16, chunk) f32
        out = jnp.dot(w3, h2.astype(cdt), preferred_element_type=jnp.float32) + b3
        o_ref[:, pl.ds(off, chunk)] = out.astype(o_ref.dtype)   # (1, chunk)


def _round_tile(n):
    """Smallest valid lane tile >= n: multiple of LANE, and of CHUNK once >= CHUNK."""
    n = max(int(n), LANE)
    if n <= CHUNK:
        return pl.cdiv(n, LANE) * LANE
    return pl.cdiv(n, CHUNK) * CHUNK


def mlp_forward(x, params, *, tn=4096, use_bf16=False, feature_major=False):
    """Fused MLP forward.

    x: [N, 11] float32 (or [11, N] if feature_major=True, skipping the
    wrapper-side transpose entirely).
    params: w_i [out, in], b_i [out, 1] (PyTorch nn.Linear layout).
    Returns [N, 1] float32.
    """
    if feature_major:
        F_in, N = x.shape
        x_t = x
    else:
        N, F_in = x.shape
        x_t = x.T                      # [11, N]; pass feature-major data to avoid this

    w1, b1, w2, b2, w3, b3 = (params[k] for k in ("w1", "b1", "w2", "b2", "w3", "b3"))

    # --- tile-size selection -------------------------------------------------
    # Never bigger than the (rounded-up) batch, and shrink further for mid-size
    # batches so the grid has >= MIN_GRID_STEPS steps (DMA/compute overlap, and
    # both v7x TensorCores get several steps each).  Per-step VMEM at tn=4096 is
    # ~0.4 MiB (x tile 176 KiB + out 16 KiB + weights ~14 KiB, x2 buffers) plus
    # <= 256 KiB of in-kernel h1 spill -- far under every generation's scoped
    # VMEM default (v5e ~16 MiB, v6e/v7x ~32 MiB).  If tn is ever pushed past
    # ~16k, set pltpu.CompilerParams(vmem_limit_bytes=...) explicitly and keep
    # v7x's 64 MiB physical VMEM in mind; gains flatten beyond tn ~ 8-16k anyway.
    tn = _round_tile(min(int(tn), N))
    if pl.cdiv(N, tn) < MIN_GRID_STEPS and N > MIN_GRID_STEPS * LANE:
        tn = _round_tile(pl.cdiv(N, MIN_GRID_STEPS))
    n_pad = pl.cdiv(N, tn) * tn
    grid = (n_pad // tn,)

    # Ragged batches: tail-only pad (no full zero buffer written + overwritten).
    if n_pad != N:
        x_t = jnp.pad(x_t, ((0, 0), (0, n_pad - N)))

    if use_bf16:
        # MXU-native inputs; accumulation / bias / ReLU stay f32 in the kernel.
        x_t = x_t.astype(jnp.bfloat16)
        w1, w2, w3 = (w.astype(jnp.bfloat16) for w in (w1, w2, w3))

    full = lambda i: (0, 0)  # weights / biases resident for every batch tile

    out_t = pl.pallas_call(
        mlp_kernel,
        out_shape=jax.ShapeDtypeStruct((1, n_pad), jnp.float32),
        grid_spec=pltpu.PrefetchScalarGridSpec(
            num_scalar_prefetch=0,
            grid=grid,
            in_specs=[
                pl.BlockSpec((F_in, tn), lambda i: (0, i)),   # x tile (11, TN)
                pl.BlockSpec(w1.shape, full),                 # (128, 11)
                pl.BlockSpec(b1.shape, full),                 # (128, 1)
                pl.BlockSpec(w2.shape, full),                 # (16, 128)
                pl.BlockSpec(b2.shape, full),                 # (16, 1)
                pl.BlockSpec(w3.shape, full),                 # (1, 16)
                pl.BlockSpec(b3.shape, full),                 # (1, 1)
            ],
            out_specs=pl.BlockSpec((1, tn), lambda i: (0, i)),
        ),
        compiler_params=pltpu.CompilerParams(
            dimension_semantics=("parallel",),
        ),
    )(x_t, w1, b1, w2, b2, w3, b3)

    # Back to [N, 1] (drop the zero-padded tail).
    return out_t[:, :N].T


def init_params(key):
    """Deterministic init mirroring torch.nn.Linear: w [out, in], b [out, 1]."""
    dims = [(11, 128), (128, 16), (16, 1)]  # (fan_in, fan_out) per layer
    params = {}
    for idx, (fan_in, fan_out) in enumerate(dims, start=1):
        key, kw, kb = jax.random.split(key, 3)
        bound = 1.0 / jnp.sqrt(jnp.float32(fan_in))
        params[f"w{idx}"] = jax.random.uniform(
            kw, (fan_out, fan_in), jnp.float32, -bound, bound
        )
        params[f"b{idx}"] = jax.random.uniform(
            kb, (fan_out, 1), jnp.float32, -bound, bound
        )
    return params


def mlp_reference(x, params):
    h = jnp.maximum(x @ params["w1"].T + params["b1"].T, 0.0)
    h = jnp.maximum(h @ params["w2"].T + params["b2"].T, 0.0)
    return h @ params["w3"].T + params["b3"].T


if __name__ == "__main__":
    key = jax.random.PRNGKey(0)
    key, kx1, kx2 = jax.random.split(key, 3)
    params = init_params(key)

    # Small ragged batch (not a multiple of 128): single tile < CHUNK,
    # exercises the padded-tail path without huge-tile padding waste.
    x_small = jax.random.normal(kx1, (300, 11), dtype=jnp.float32)
    out_small = jax.block_until_ready(mlp_forward(x_small, params))
    ref_small = mlp_reference(x_small, params)
    assert out_small.shape == (300, 1)
    assert jnp.allclose(out_small, ref_small, atol=1e-4, rtol=1e-4), "small-batch mismatch"

    # Larger ragged batch: multi-step grid (grid clamp) + multi-chunk in-kernel loop.
    x_big = jax.random.normal(kx2, (9000, 11), dtype=jnp.float32)
    out_big = jax.block_until_ready(mlp_forward(x_big, params))
    ref_big = mlp_reference(x_big, params)
    assert out_big.shape == (9000, 1)
    assert jnp.allclose(out_big, ref_big, atol=1e-4, rtol=1e-4), "big-batch mismatch"

    # Optional bf16 MXU-input path (f32 accumulation): relaxed tolerance.
    out_bf16 = jax.block_until_ready(mlp_forward(x_big, params, use_bf16=True))
    assert jnp.allclose(out_bf16, ref_big, atol=5e-2, rtol=5e-2), "bf16 path mismatch"

    print("KERNEL_OK")
</pallas_src>

<mosaic_0001>
module attributes {stable_mosaic.version = 11 : i64} {
  func.func @mlp_kernel(%arg0: i32, %arg1: memref<11x384xf32, #tpu.memory_space<vmem>>, %arg2: memref<128x11xf32, #tpu.memory_space<vmem>>, %arg3: memref<128x1xf32, #tpu.memory_space<vmem>>, %arg4: memref<16x128xf32, #tpu.memory_space<vmem>>, %arg5: memref<16x1xf32, #tpu.memory_space<vmem>>, %arg6: memref<1x16xf32, #tpu.memory_space<vmem>>, %arg7: memref<1x1xf32, #tpu.memory_space<vmem>>, %arg8: memref<1x384xf32, #tpu.memory_space<vmem>>) attributes {dimension_semantics = [#tpu.dimension_semantics<parallel>], iteration_bounds = array<i64: 1>, scalar_prefetch = 0 : i64, scratch_operands = 0 : i64, tpu.core_type = #tpu.core_type<tc>, window_params = [{transform_indices = @transform_0, window_bounds = array<i64: 11, 384>}, {pipeline_mode = #tpu.pipeline_mode<synchronous>, transform_indices = @transform_1, window_bounds = array<i64: 128, 11>}, {pipeline_mode = #tpu.pipeline_mode<synchronous>, transform_indices = @transform_2, window_bounds = array<i64: 128, 1>}, {pipeline_mode = #tpu.pipeline_mode<synchronous>, transform_indices = @transform_3, window_bounds = array<i64: 16, 128>}, {pipeline_mode = #tpu.pipeline_mode<synchronous>, transform_indices = @transform_4, window_bounds = array<i64: 16, 1>}, {pipeline_mode = #tpu.pipeline_mode<synchronous>, transform_indices = @transform_5, window_bounds = array<i64: 1, 16>}, {pipeline_mode = #tpu.pipeline_mode<synchronous>, transform_indices = @transform_6, window_bounds = array<i64: 1, 1>}, {transform_indices = @transform_7, window_bounds = array<i64: 1, 384>}]} {
    %c0 = arith.constant 0 : index
    %c0_0 = arith.constant 0 : index
    %0 = vector.load %arg2[%c0, %c0_0] : memref<128x11xf32, #tpu.memory_space<vmem>>, vector<128x11xf32>
    %c0_1 = arith.constant 0 : index
    %c0_2 = arith.constant 0 : index
    %1 = vector.load %arg3[%c0_1, %c0_2] : memref<128x1xf32, #tpu.memory_space<vmem>>, vector<128x1xf32>
    %c0_3 = arith.constant 0 : index
    %c0_4 = arith.constant 0 : index
    %2 = vector.load %arg4[%c0_3, %c0_4] : memref<16x128xf32, #tpu.memory_space<vmem>>, vector<16x128xf32>
    %c0_5 = arith.constant 0 : index
    %c0_6 = arith.constant 0 : index
    %3 = vector.load %arg5[%c0_5, %c0_6] : memref<16x1xf32, #tpu.memory_space<vmem>>, vector<16x1xf32>
    %c0_7 = arith.constant 0 : index
    %c0_8 = arith.constant 0 : index
    %4 = vector.load %arg6[%c0_7, %c0_8] : memref<1x16xf32, #tpu.memory_space<vmem>>, vector<1x16xf32>
    %c0_9 = arith.constant 0 : index
    %c0_10 = arith.constant 0 : index
    %5 = vector.load %arg7[%c0_9, %c0_10] : memref<1x1xf32, #tpu.memory_space<vmem>>, vector<1x1xf32>
    %c0_11 = arith.constant 0 : index
    %c0_12 = arith.constant 0 : index
    %6 = vector.load %arg1[%c0_11, %c0_12] : memref<11x384xf32, #tpu.memory_space<vmem>>, vector<11x384xf32>
    %cst = arith.constant dense<0.000000e+00> : vector<128x384xf32>
    %7 = tpu.matmul %0, %6, %cst {dimension_numbers = #tpu.dot_dimension_numbers<[1], [0], [0], [1], [0, 0, 1, 1], [], []>} : vector<128x11xf32>, vector<11x384xf32>, vector<128x384xf32> -> vector<128x384xf32>
    %8 = vector.broadcast %1 : vector<128x1xf32> to vector<128x384xf32>
    %9 = arith.addf %7, %8 : vector<128x384xf32>
    %cst_13 = arith.constant 0.000000e+00 : f32
    %10 = vector.broadcast %cst_13 : f32 to vector<128x384xf32>
    %11 = arith.maximumf %9, %10 : vector<128x384xf32>
    %cst_14 = arith.constant dense<0.000000e+00> : vector<16x384xf32>
    %12 = tpu.matmul %2, %11, %cst_14 {dimension_numbers = #tpu.dot_dimension_numbers<[1], [0], [0], [1], [0, 0, 1, 1], [], []>} : vector<16x128xf32>, vector<128x384xf32>, vector<16x384xf32> -> vector<16x384xf32>
    %13 = vector.broadcast %3 : vector<16x1xf32> to vector<16x384xf32>
    %14 = arith.addf %12, %13 : vector<16x384xf32>
    %cst_15 = arith.constant 0.000000e+00 : f32
    %15 = vector.broadcast %cst_15 : f32 to vector<16x384xf32>
    %16 = arith.maximumf %14, %15 : vector<16x384xf32>
    %cst_16 = arith.constant dense<0.000000e+00> : vector<1x384xf32>
    %17 = tpu.matmul %4, %16, %cst_16 {dimension_numbers = #tpu.dot_dimension_numbers<[1], [0], [0], [1], [0, 0, 1, 1], [], []>} : vector<1x16xf32>, vector<16x384xf32>, vector<1x384xf32> -> vector<1x384xf32>
    %18 = vector.broadcast %5 : vector<1x1xf32> to vector<1x384xf32>
    %19 = arith.addf %17, %18 : vector<1x384xf32>
    %c0_17 = arith.constant 0 : index
    %c0_18 = arith.constant 0 : index
    %20 = vector.load %arg8[%c0_17, %c0_18] : memref<1x384xf32, #tpu.memory_space<vmem>>, vector<1x384xf32>
    tpu.vector_store %arg8[%c0_17, %c0_18], %19 {strides = array<i32>} : memref<1x384xf32, #tpu.memory_space<vmem>>, vector<1x384xf32>,
    return
  }
  func.func @transform_0(%arg0: i32) -> (i32, i32) {
    %c0_i32 = arith.constant 0 : i32
    %c0_i32_0 = arith.constant 0 : i32
    return %c0_i32, %arg0 : i32, i32
  }
  func.func @transform_1(%arg0: i32) -> (i32, i32) {
    %c0_i32 = arith.constant 0 : i32
    %c0_i32_0 = arith.constant 0 : i32
    %c0_i32_1 = arith.constant 0 : i32
    return %c0_i32, %c0_i32_0 : i32, i32
  }
  func.func @transform_2(%arg0: i32) -> (i32, i32) {
    %c0_i32 = arith.constant 0 : i32
    %c0_i32_0 = arith.constant 0 : i32
    %c0_i32_1 = arith.constant 0 : i32
    return %c0_i32, %c0_i32_0 : i32, i32
  }
  func.func @transform_3(%arg0: i32) -> (i32, i32) {
    %c0_i32 = arith.constant 0 : i32
    %c0_i32_0 = arith.constant 0 : i32
    %c0_i32_1 = arith.constant 0 : i32
    return %c0_i32, %c0_i32_0 : i32, i32
  }
  func.func @transform_4(%arg0: i32) -> (i32, i32) {
    %c0_i32 = arith.constant 0 : i32
    %c0_i32_0 = arith.constant 0 : i32
    %c0_i32_1 = arith.constant 0 : i32
    return %c0_i32, %c0_i32_0 : i32, i32
  }
  func.func @transform_5(%arg0: i32) -> (i32, i32) {
    %c0_i32 = arith.constant 0 : i32
    %c0_i32_0 = arith.constant 0 : i32
    %c0_i32_1 = arith.constant 0 : i32
    return %c0_i32, %c0_i32_0 : i32, i32
  }
  func.func @transform_6(%arg0: i32) -> (i32, i32) {
    %c0_i32 = arith.constant 0 : i32
    %c0_i32_0 = arith.constant 0 : i32
    %c0_i32_1 = arith.constant 0 : i32
    return %c0_i32, %c0_i32_0 : i32, i32
  }
  func.func @transform_7(%arg0: i32) -> (i32, i32) {
    %c0_i32 = arith.constant 0 : i32
    %c0_i32_0 = arith.constant 0 : i32
    return %c0_i32, %arg0 : i32, i32
  }
}

</mosaic_0001>

<bundles_post_ra>
// kernel: tpu_custom_call.1
= control target key start
LH: loop header
LB: loop body
LE: loop exit
PB: predicated region body
PF: predicated region fallthrough
CT: control target
= control target key end

     0   :  { %s1540_s0 = inlined_call_operand.vmem [shape: f32[11,384], index: 0, kind: input, shape index: {}]   ;;  %s1541_s1 = inlined_call_operand.vmem [shape: f32[128,11], index: 1, kind: input, shape index: {}]   ;;  %s1542_s2 = inlined_call_operand.vmem [shape: f32[128,1], index: 2, kind: input, shape index: {}]   ;;  %s1543_s3 = inlined_call_operand.vmem [shape: f32[16,128], index: 3, kind: input, shape index: {}]   ;;  %s1544_s4 = inlined_call_operand.vmem [shape: f32[16,1], index: 4, kind: input, shape index: {}]   ;;  %s1545_s5 = inlined_call_operand.vmem [shape: f32[1,16], index: 5, kind: input, shape index: {}]   ;;  %s1546_s6 = inlined_call_operand.<no memory space> [shape: f32[1,1], index: 6, kind: input, shape index: {}]   ;;  %s1547_s7 = inlined_call_operand.hbm [shape: f32[1,384], index: 7, kind: output, shape index: {}]  }
   0x1   :  { %v12_v0 = vstv %s1546_s6 }
   0x2   :  { %13 = vst [vmem:[#allocation2] sm:$0x1] %v12_v0 }
   0x3   :  { %v68_v1 = vld [vmem:[%s1540_s0 + $0x8] sm:$0xff]  ;;  %v71_v2 = vld [vmem:[%s1540_s0 + $0x20] sm:$0x7]  ;;  %vm202_vm0 = vcmask 1042432   ;;  %vm1198_vm1 = vmmov 1   ;;  %v1199_v8 = vmov 0.0  }
   0x4   :  { %v67_v3 = vld [vmem:[%s1540_s0] sm:$0xff]  ;;  %v1080_v4 = vpack.c.bf16 %v71_v2, %v68_v1  ;;  %vm1257_vm2 = vmpackc.low %vm202_vm0, %vm1198_vm1  ;;  %v70_v6 = vld [vmem:[%s1540_s0 + $0x18] sm:$0x7]  ;;  %276 = vmatprep.mubr.f32.mxu0 %v1199_v8  ;;  %360 = vmatprep.mubr.f32.mxu1 %v1199_v8  ;;  %vm153_vm3 = vcmask 89088   ;;  %v1200_v14 = vmov 0  }
   0x5   :  { %v1083_v7 = vpack.c.bf16 %v70_v6, %v67_v3  ;;  %v69_v9 = vld [vmem:[%s1540_s0 + $0x10] sm:$0xff]  ;;  %v72_v10 = vld [vmem:[%s1540_s0 + $0x28] sm:$0x7]  ;;  %v29_v11 = vld [vmem:[%s1541_s1] sm:$0xff]  ;;  %1172 = vset.pattern.permute.xlu0 %v1200_v14  ;;  %1173 = vset.pattern.permute.xlu1 %v1200_v14 }
   0x6   :  { %1082 = vmatprep.subr.msk.bf16.mxu0 %vm1257_vm2, %v1080_v4  ;;  %1163 = vmatprep.subr.msk.bf16.mxu1 %vm1257_vm2, %v1080_v4  ;;  %v1286_v12 = vld [vmem:[%s1541_s1 + $0x70] sm:$0xff]  ;;  %v1086_v13 = vpack.c.bf16 %v72_v10, %v69_v9  ;;  %v45_v15 = vld [vmem:[%s1542_s2] sm:$0xff]  ;;  %v30_v16 = vld [vmem:[%s1541_s1 + $0x8] sm:$0xff] }
   0x7   :  { %1085 = vmatpush1.bf16.msk.msra.mxu0 %vm1257_vm2, %v1083_v7  ;;  %1164 = vmatpush1.bf16.msk.msra.mxu1 %vm1257_vm2, %v1083_v7  ;;  %v1304_v17 = vld [vmem:[%s1541_s1 + $0x78] sm:$0xff]  ;;  %v47_v18 = vld [vmem:[%s1542_s2 + $0x10] sm:$0xff]  ;;  %v46_v19 = vld [vmem:[%s1542_s2 + $0x8] sm:$0xff] }
   0x8   :  { %1088 = vmatprep.subr.msk.bf16.mxu1 %vm1257_vm2, %v1086_v13  ;;  %75 = vperm.xlu0 %1172, %v45_v15   ;;  %v48_v20 = vld [vmem:[%s1542_s2 + $0x18] sm:$0xff]  ;;  %v31_v21 = vld [vmem:[%s1541_s1 + $0x10] sm:$0xff]  ;;  %v49_v22 = vld [vmem:[%s1542_s2 + $0x20] sm:$0xff] }
   0x9   :  { %85 = vperm.xlu1 %1173, %v47_v18  }
   0xa   :  { %936 = vmatmul.mubr.msk.f32.vlgmr.msra.gmra.mrb[0].mxu0 %vm153_vm3, %v29_v11  ;;  %950 = vmatmul.mubr.msk.f32.vlgmr.msra.gmra.mrb[0].mxu1 %vm153_vm3, %v1286_v12 }
   0xb   :  { %282 = vmatprep.mubr.f32.mxu0 %v1199_v8  ;;  %366 = vmatprep.mubr.f32.mxu1 %v1199_v8 }
   0xc   :  { %1091 = vmatpush3.bf16.msk.msra.mxu1 %vm1257_vm2, %v1086_v13  ;;  %80 = vperm.xlu0 %1172, %v46_v19  }
   0xd   :  { %90 = vperm.xlu1 %1173, %v48_v20  }
   0xe   :  { %937 = vmatmul.mubr.msk.f32.gmra.mrb[2].mxu0 %vm153_vm3, %v30_v16  ;;  %951 = vmatmul.mubr.msk.f32.gmra.mrb[2].mxu1 %vm153_vm3, %v1304_v17 }
   0xf   :  { %288 = vmatprep.mubr.f32.mxu0 %v1199_v8  ;;  %1014 = vmatprep.mubr.msk.f32.mxu1 %vm153_vm3, %v29_v11 }
  0x10   :  { %14 = vsyncpa [#allocation4], 0  ;;  %v50_v23 = vld [vmem:[%s1542_s2 + $0x28] sm:$0xff]  ;;  %v32_v24 = vld [vmem:[%s1541_s1 + $0x18] sm:$0xff]  ;;  %95 = vperm.xlu0 %1172, %v49_v22   ;;  %vm743_vm4 = vcmask 130048   ;;  %vm1202_vm5 = vmmov 0  }
  0x11   :  { %v33_v25 = vld [vmem:[%s1541_s1 + $0x20] sm:$0xff]  ;;  %100 = vperm.xlu1 %1173, %v50_v23   ;;  %v51_v26 = vld [vmem:[%s1542_s2 + $0x30] sm:$0xff]  ;;  %v52_v27 = vld [vmem:[%s1542_s2 + $0x38] sm:$0xff] }
  0x12   :  { %938 = vmatmul.mubr.msk.f32.gmra.mrb[4].mxu0 %vm153_vm3, %v31_v21  ;;  %1015 = vmatmul.mubr.msk.f32.vlgmr.msra.gmra.mrb[4].mxu1 %vm153_vm3, %v30_v16  ;;  %v34_v28 = vld [vmem:[%s1541_s1 + $0x28] sm:$0xff]  ;;  %v35_v29 = vld [vmem:[%s1541_s1 + $0x30] sm:$0xff]  ;;  %v53_v30 = vld [vmem:[%s1542_s2 + $0x40] sm:$0xff] }
  0x13   :  { %294 = vmatprep.mubr.f32.mxu0 %v1199_v8  ;;  %1017 = vmatprep.mubr.msk.f32.mxu1 %vm153_vm3, %v31_v21  ;;  %v54_v31 = vld [vmem:[%s1542_s2 + $0x48] sm:$0xff]  ;;  %v36_v32 = vld [vmem:[%s1541_s1 + $0x38] sm:$0xff]  ;;  %v37_v33 = vld [vmem:[%s1541_s1 + $0x40] sm:$0xff] }
  0x14   :  { %105 = vperm.xlu0 %1172, %v51_v26   ;;  %v55_v34 = vld [vmem:[%s1542_s2 + $0x50] sm:$0xff]  ;;  %v56_v35 = vld [vmem:[%s1542_s2 + $0x58] sm:$0xff]  ;;  %v38_v36 = vld [vmem:[%s1541_s1 + $0x48] sm:$0xff] }
  0x15   :  { %110 = vperm.xlu1 %1173, %v52_v27   ;;  %v39_v37 = vld [vmem:[%s1541_s1 + $0x50] sm:$0xff]  ;;  %v57_v38 = vld [vmem:[%s1542_s2 + $0x60] sm:$0xff]  ;;  %v58_v39 = vld [vmem:[%s1542_s2 + $0x68] sm:$0xff] }
  0x16   :  { %939 = vmatmul.mubr.msk.f32.gmra.mrb[6].mxu0 %vm153_vm3, %v32_v24  ;;  %1018 = vmatmul.mubr.msk.f32.gmra.mrb[6].mxu1 %vm153_vm3, %v32_v24  ;;  %v40_v40 = vld [vmem:[%s1541_s1 + $0x58] sm:$0xff]  ;;  %v41_v41 = vld [vmem:[%s1541_s1 + $0x60] sm:$0xff]  ;;  %v59_v42 = vld [vmem:[%s1542_s2 + $0x70] sm:$0xff] }
  0x17   :  { %300 = vmatprep.mubr.f32.mxu0 %v1199_v8  ;;  %1020 = vmatprep.mubr.msk.f32.mxu1 %vm153_vm3, %v33_v25  ;;  %v60_v43 = vld [vmem:[%s1542_s2 + $0x78] sm:$0xff]  ;;  %v42_v44 = vld [vmem:[%s1541_s1 + $0x68] sm:$0xff]  ;;  %v63_v45 = vld [vmem:[%s1544_s4] sm:$0xff] }
  0x18   :  { %115 = vperm.xlu0 %1172, %v53_v30   ;;  %v64_v46 = vld [vmem:[%s1544_s4 + $0x8] sm:$0xff]  ;;  %v66_v47 = vld [vmem:[#allocation2] sm:$0x1] }
  0x19   :  { %120 = vperm.xlu1 %1173, %v54_v31   ;;  %v1444_v48 = vld [vmem:[%s1543_s3] sm:$0xff] }
  0x1a   :  { %940 = vmatmul.mubr.msk.f32.gmra.mrb[8].mxu0 %vm153_vm3, %v33_v25  ;;  %1021 = vmatmul.mubr.msk.f32.gmra.mrb[8].mxu1 %vm153_vm3, %v34_v28 }
  0x1b   :  { %306 = vmatprep.mubr.f32.mxu0 %v1199_v8  ;;  %1023 = vmatprep.mubr.msk.f32.mxu1 %vm153_vm3, %v35_v29 }
  0x1c   :  { %125 = vperm.xlu0 %1172, %v55_v34  }
  0x1d   :  { %130 = vperm.xlu1 %1173, %v56_v35  }
  0x1e   :  { %941 = vmatmul.mubr.msk.f32.gmra.mrb[10].mxu0 %vm153_vm3, %v34_v28  ;;  %1024 = vmatmul.mubr.msk.f32.gmra.mrb[10].mxu1 %vm153_vm3, %v36_v32 }
  0x1f   :  { %312 = vmatprep.mubr.f32.mxu0 %v1199_v8  ;;  %1026 = vmatprep.mubr.msk.f32.mxu1 %vm153_vm3, %v37_v33 }
  0x20   :  { %135 = vperm.xlu0 %1172, %v57_v38  }
  0x21   :  { %140 = vperm.xlu1 %1173, %v58_v39  }
  0x22   :  { %942 = vmatmul.mubr.msk.f32.gmra.mrb[12].mxu0 %vm153_vm3, %v35_v29  ;;  %1027 = vmatmul.mubr.msk.f32.gmra.mrb[12].mxu1 %vm153_vm3, %v38_v36 }
  0x23   :  { %318 = vmatprep.mubr.f32.mxu0 %v1199_v8  ;;  %1029 = vmatprep.mubr.msk.f32.mxu1 %vm153_vm3, %v39_v37 }
  0x24   :  { %145 = vperm.xlu0 %1172, %v59_v42  }
  0x25   :  { %150 = vperm.xlu1 %1173, %v60_v43  }
  0x26   :  { %943 = vmatmul.mubr.msk.f32.gmra.mrb[14].mxu0 %vm153_vm3, %v36_v32  ;;  %1030 = vmatmul.mubr.msk.f32.gmra.mrb[14].mxu1 %vm153_vm3, %v40_v40 }
  0x27   :  { %324 = vmatprep.mubr.f32.mxu0 %v1199_v8  ;;  %1032 = vmatprep.mubr.msk.f32.mxu1 %vm153_vm3, %v41_v41 }
  0x28   :  { %568 = vperm.xlu0 %1172, %v63_v45  }
  0x29   :  { %573 = vperm.xlu1 %1173, %v64_v46  }
  0x2a   :  { %944 = vmatmul.mubr.msk.f32.gmra.mrb[16].mxu0 %vm153_vm3, %v37_v33  ;;  %1033 = vmatmul.mubr.msk.f32.gmra.mrb[16].mxu1 %vm153_vm3, %v42_v44 }
  0x2b   :  { %330 = vmatprep.mubr.f32.mxu0 %v1199_v8  ;;  %1035 = vmatprep.mubr.msk.f32.mxu1 %vm153_vm3, %v1286_v12 }
  0x2c   :  { %736 = vperm.xlu0 %1172, %v66_v47  }
  0x2e   :  { %945 = vmatmul.mubr.msk.f32.gmra.mrb[18].mxu0 %vm153_vm3, %v38_v36  ;;  %1036 = vmatmul.mubr.msk.f32.gmra.mrb[18].mxu1 %vm153_vm3, %v1304_v17 }
  0x2f   :  { %336 = vmatprep.mubr.f32.mxu0 %v1199_v8  ;;  %640 = vmatprep.mubr.f32.mxu1 %v1199_v8 }
  0x32   :  { %946 = vmatmul.mubr.msk.f32.gmra.mrb[20].mxu0 %vm153_vm3, %v39_v37 }
  0x33   :  { %342 = vmatprep.mubr.f32.mxu0 %v1199_v8 }
  0x36   :  { %947 = vmatmul.mubr.msk.f32.gmra.mrb[22].mxu0 %vm153_vm3, %v40_v40 }
  0x37   :  { %348 = vmatprep.mubr.f32.mxu0 %v1199_v8 }
  0x3a   :  { %948 = vmatmul.mubr.msk.f32.gmra.mrb[24].mxu0 %vm153_vm3, %v41_v41 }
  0x3b   :  { %354 = vmatprep.mubr.f32.mxu0 %v1199_v8 }
  0x3e   :  { %949 = vmatmul.mubr.msk.f32.gmra.mrb[26].mxu0 %vm153_vm3, %v42_v44 }
  0x3f   :  { %1070 = vmatprep.mubr.f32.mxu0 %v1444_v48 }
  0x87   :  { %v76_v49 = vpop.permute.xlu0 %75 }
  0x88   :  { %v1447_v50 = vpop.permute.xlu1 %85 }
  0x8b   :  { %v81_v51 = vpop.permute.xlu0 %80 }
  0x8c   :  { %v91_v52 = vpop.permute.xlu1 %90 }
  0x8f   :  { %v1449_v53 = vpop.permute.xlu0 %95 }
  0x90   :  { %v1451_v54 = vpop.permute.xlu1 %100 }
  0x93   :  { %v1453_v55 = vpop.permute.xlu0 %105 }
  0x94   :  { %v1455_v56 = vpop.permute.xlu1 %110 }
  0x97   :  { %v1457_v57 = vpop.permute.xlu0 %115 }
  0x98   :  { %v1459_v58 = vpop.permute.xlu1 %120 }
  0x9b   :  { %v1461_v59 = vpop.permute.xlu0 %125 }
  0x9c   :  { %v1463_v60 = vpop.permute.xlu1 %130 }
  0x9f   :  { %v1465_v61 = vpop.permute.xlu0 %135 }
  0xa0   :  { %v1467_v62 = vpop.permute.xlu1 %140 }
  0xa3   :  { %v1469_v63 = vpop.permute.xlu0 %145 }
  0xa4   :  { %v1473_v6 = vpop.permute.xlu1 %150 }
  0xdd   :  { %v278_v0 = vpop.f32.mrb[0].mxu0  ;;  %v362_v1 = vpop.f32.mrb[0].mxu1 }
  0xde   :  { %v280_v2 = vpop.f32.mrb[1].mxu0  ;;  %v364_v3 = vpop.f32.mrb[1].mxu1  ;;  %v363_v4 = vadd.f32 %v362_v1, %v1469_v63  ;;  %v279_v7 = vadd.f32 %v278_v0, %v76_v49 }
  0xdf   :  { %v365_v5 = vadd.f32 %v364_v3, %v1469_v63  ;;  %v281_v9 = vadd.f32 %v280_v2, %v76_v49 }
  0xe0   :  { %v560_v14 = vmax.f32 %v363_v4, 0.0  ;;  %v518_v20 = vmax.f32 %v279_v7, 0.0 }
  0xe1   :  { %v284_v10 = vpop.f32.mrb[2].mxu0  ;;  %v368_v11 = vpop.f32.mrb[2].mxu1  ;;  %v561_v18 = vmax.f32 %v365_v5, 0.0  ;;  %v519_v23 = vmax.f32 %v281_v9, 0.0 }
  0xe2   :  { %v285_v12 = vadd.f32 %v284_v10, %v81_v51  ;;  %v286_v13 = vpop.f32.mrb[3].mxu0  ;;  %v370_v15 = vpop.f32.mrb[3].mxu1  ;;  %v369_v16 = vadd.f32 %v368_v11, %v1473_v6 }
  0xe3   :  { %v287_v17 = vadd.f32 %v286_v13, %v81_v51  ;;  %v371_v19 = vadd.f32 %v370_v15, %v1473_v6 }
  0xe4   :  { %v521_v21 = vmax.f32 %v285_v12, 0.0  ;;  %v563_v22 = vmax.f32 %v369_v16, 0.0 }
  0xe5   :  { %v522_v24 = vmax.f32 %v287_v17, 0.0  ;;  %v290_v25 = vpop.f32.mrb[4].mxu0  ;;  %v1016_v26 = vpop.f32.mrb[4].mxu1  ;;  %v564_v27 = vmax.f32 %v371_v19, 0.0 }
  0xe6   :  { %v1094_v28 = vpack.c.bf16 %v521_v21, %v518_v20  ;;  %v445_v29 = vadd.f32 %v1016_v26, %v81_v51  ;;  %v1477_v30 = vpack.c.bf16 %v563_v22, %v560_v14  ;;  %v292_v31 = vpop.f32.mrb[5].mxu0  ;;  %v439_v32 = vpop.f32.mrb[5].mxu1  ;;  %v291_v36 = vadd.f32 %v290_v25, %v1447_v50 }
  0xe7   :  { %v1092_v33 = vpack.c.bf16 %v522_v24, %v519_v23  ;;  %v440_v34 = vadd.f32 %v439_v32, %v76_v49  ;;  %v1479_v35 = vpack.c.bf16 %v564_v27, %v561_v18  ;;  %v293_v38 = vadd.f32 %v292_v31, %v1447_v50 }
  0xe8   :  { %v523_v37 = vmax.f32 %v445_v29, 0.0  ;;  %v524_v51 = vmax.f32 %v291_v36, 0.0 }
  0xe9   :  { %v520_v39 = vmax.f32 %v440_v34, 0.0  ;;  %v296_v40 = vpop.f32.mrb[6].mxu0  ;;  %v1019_v41 = vpop.f32.mrb[6].mxu1  ;;  %1093 = vmatprep.subr.bf16.mxu1 %v1092_v33  ;;  %v525_v2 = vmax.f32 %v293_v38, 0.0 }
  0xea   :  { %v297_v42 = vadd.f32 %v296_v40, %v91_v52  ;;  %v455_v43 = vadd.f32 %v1019_v41, %v91_v52  ;;  %v298_v44 = vpop.f32.mrb[7].mxu0  ;;  %v449_v45 = vpop.f32.mrb[7].mxu1  ;;  %1095 = vmatpush1.bf16.msra.mxu1 %v1094_v28 }
  0xeb   :  { %v1124_v46 = vpack.c.bf16 %v523_v37, %v520_v39  ;;  %v299_v47 = vadd.f32 %v298_v44, %v91_v52  ;;  %v450_v49 = vadd.f32 %v449_v45, %v1447_v50 }
  0xec   :  { %v527_v0 = vmax.f32 %v297_v42, 0.0  ;;  %v529_v1 = vmax.f32 %v455_v43, 0.0 }
  0xed   :  { %v528_v3 = vmax.f32 %v299_v47, 0.0  ;;  %v526_v4 = vmax.f32 %v450_v49, 0.0  ;;  %v302_v5 = vpop.f32.mrb[8].mxu0  ;;  %v1022_v7 = vpop.f32.mrb[8].mxu1  ;;  %1125 = vmatprep.subr.bf16.mxu0 %v1124_v46 }
  0xee   :  { %v1098_v9 = vpack.c.bf16 %v527_v0, %v524_v51  ;;  %v465_v10 = vadd.f32 %v1022_v7, %v1451_v54  ;;  %v304_v11 = vpop.f32.mrb[9].mxu0  ;;  %v459_v12 = vpop.f32.mrb[9].mxu1  ;;  %1127 = vmatpush3.bf16.msra.mxu0 %v1124_v46  ;;  %v303_v50 = vadd.f32 %v302_v5, %v1449_v53 }
  0xef   :  { %v1096_v13 = vpack.c.bf16 %v528_v3, %v525_v2  ;;  %v1128_v14 = vpack.c.bf16 %v529_v1, %v526_v4  ;;  %v460_v52 = vadd.f32 %v459_v12, %v1449_v53  ;;  %v305_v16 = vadd.f32 %v304_v11, %v1449_v53 }
  0xf0   :  { %v535_v15 = vmax.f32 %v465_v10, 0.0  ;;  %v530_v27 = vmax.f32 %v303_v50, 0.0 }
  0xf1   :  { %v532_v17 = vmax.f32 %v460_v52, 0.0  ;;  %v308_v18 = vpop.f32.mrb[10].mxu0  ;;  %v1025_v19 = vpop.f32.mrb[10].mxu1  ;;  %1097 = vmatprep.subr.bf16.mxu1 %v1096_v13  ;;  %1129 = vmatprep.subr.bf16.mxu0 %v1128_v14  ;;  %v531_v29 = vmax.f32 %v305_v16, 0.0 }
  0xf2   :  { %v309_v20 = vadd.f32 %v308_v18, %v1451_v54  ;;  %v475_v21 = vadd.f32 %v1025_v19, %v1455_v56  ;;  %v310_v22 = vpop.f32.mrb[11].mxu0  ;;  %v469_v23 = vpop.f32.mrb[11].mxu1  ;;  %1099 = vmatpush1.bf16.msra.mxu1 %v1098_v9  ;;  %1131 = vmatpush3.bf16.msra.mxu0 %v1128_v14 }
  0xf3   :  { %v1132_v24 = vpack.c.bf16 %v535_v15, %v532_v17  ;;  %v311_v25 = vadd.f32 %v310_v22, %v1451_v54  ;;  %v470_v26 = vadd.f32 %v469_v23, %v1453_v55 }
  0xf4   :  { %v533_v53 = vmax.f32 %v309_v20, 0.0  ;;  %v541_v28 = vmax.f32 %v475_v21, 0.0 }
  0xf5   :  { %v534_v31 = vmax.f32 %v311_v25, 0.0  ;;  %v538_v32 = vmax.f32 %v470_v26, 0.0  ;;  %v314_v33 = vpop.f32.mrb[12].mxu0  ;;  %v1028_v34 = vpop.f32.mrb[12].mxu1  ;;  %1133 = vmatprep.subr.bf16.mxu0 %v1132_v24 }
  0xf6   :  { %v1102_v36 = vpack.c.bf16 %v533_v53, %v530_v27  ;;  %v485_v37 = vadd.f32 %v1028_v34, %v1459_v58  ;;  %v316_v38 = vpop.f32.mrb[13].mxu0  ;;  %v479_v39 = vpop.f32.mrb[13].mxu1  ;;  %1135 = vmatpush3.bf16.msra.mxu0 %v1132_v24  ;;  %v315_v42 = vadd.f32 %v314_v33, %v1453_v55 }
  0xf7   :  { %v1100_v40 = vpack.c.bf16 %v534_v31, %v531_v29  ;;  %v1136_v41 = vpack.c.bf16 %v541_v28, %v538_v32  ;;  %v480_v54 = vadd.f32 %v479_v39, %v1457_v57  ;;  %v317_v44 = vadd.f32 %v316_v38, %v1453_v55 }
  0xf8   :  { %v547_v43 = vmax.f32 %v485_v37, 0.0  ;;  %v536_v5 = vmax.f32 %v315_v42, 0.0 }
  0xf9   :  { %v544_v45 = vmax.f32 %v480_v54, 0.0  ;;  %v320_v46 = vpop.f32.mrb[14].mxu0  ;;  %v1031_v47 = vpop.f32.mrb[14].mxu1  ;;  %1101 = vmatprep.subr.bf16.mxu1 %v1100_v40  ;;  %1137 = vmatprep.subr.bf16.mxu0 %v1136_v41  ;;  %v537_v9 = vmax.f32 %v317_v44, 0.0 }
  0xfa   :  { %v321_v49 = vadd.f32 %v320_v46, %v1455_v56  ;;  %v495_v51 = vadd.f32 %v1031_v47, %v1463_v60  ;;  %v322_v0 = vpop.f32.mrb[15].mxu0  ;;  %v489_v1 = vpop.f32.mrb[15].mxu1  ;;  %1103 = vmatpush1.bf16.msra.mxu1 %v1102_v36  ;;  %1139 = vmatpush3.bf16.msra.mxu0 %v1136_v41 }
  0xfb   :  { %v1140_v2 = vpack.c.bf16 %v547_v43, %v544_v45  ;;  %v323_v3 = vadd.f32 %v322_v0, %v1455_v56  ;;  %v490_v4 = vadd.f32 %v489_v1, %v1461_v59  ;;  %v62_v43 = vld [vmem:[%s1543_s3 + $0x8] sm:$0xff] }
  0xfc   :  { %v539_v55 = vmax.f32 %v321_v49, 0.0  ;;  %v553_v7 = vmax.f32 %v495_v51, 0.0 }
  0xfd   :  { %v540_v10 = vmax.f32 %v323_v3, 0.0  ;;  %v550_v11 = vmax.f32 %v490_v4, 0.0  ;;  %v326_v12 = vpop.f32.mrb[16].mxu0  ;;  %v1034_v13 = vpop.f32.mrb[16].mxu1  ;;  %1141 = vmatprep.subr.bf16.mxu0 %v1140_v2 }
  0xfe   :  { %v1106_v14 = vpack.c.bf16 %v539_v55, %v536_v5  ;;  %v505_v52 = vadd.f32 %v1034_v13, %v1467_v62  ;;  %v328_v50 = vpop.f32.mrb[17].mxu0  ;;  %v499_v15 = vpop.f32.mrb[17].mxu1  ;;  %1143 = vmatpush3.bf16.msra.mxu0 %v1140_v2  ;;  %v327_v18 = vadd.f32 %v326_v12, %v1457_v57 }
  0xff   :  { %v1104_v16 = vpack.c.bf16 %v540_v10, %v537_v9  ;;  %v1144_v17 = vpack.c.bf16 %v553_v7, %v550_v11  ;;  %v500_v56 = vadd.f32 %v499_v15, %v1465_v61  ;;  %v329_v20 = vadd.f32 %v328_v50, %v1457_v57 }
 0x100   :  { %v559_v19 = vmax.f32 %v505_v52, 0.0  ;;  %v542_v31 = vmax.f32 %v327_v18, 0.0 }
 0x101   :  { %v556_v21 = vmax.f32 %v500_v56, 0.0  ;;  %v332_v22 = vpop.f32.mrb[18].mxu0  ;;  %v1037_v23 = vpop.f32.mrb[18].mxu1  ;;  %1105 = vmatprep.subr.bf16.mxu1 %v1104_v16  ;;  %1145 = vmatprep.subr.bf16.mxu0 %v1144_v17  ;;  %v543_v33 = vmax.f32 %v329_v20, 0.0 }
 0x102   :  { %v333_v24 = vadd.f32 %v332_v22, %v1459_v58  ;;  %v515_v25 = vadd.f32 %v1037_v23, %v1473_v6  ;;  %v334_v26 = vpop.f32.mrb[19].mxu0  ;;  %v509_v27 = vpop.f32.mrb[19].mxu1  ;;  %1107 = vmatpush1.bf16.msra.mxu1 %v1106_v14  ;;  %1147 = vmatpush3.bf16.msra.mxu0 %v1144_v17 }
 0x103   :  { %v1148_v53 = vpack.c.bf16 %v559_v19, %v556_v21  ;;  %v335_v28 = vadd.f32 %v334_v26, %v1459_v58  ;;  %v510_v29 = vadd.f32 %v509_v27, %v1469_v63  ;;  %v569_v14 = vpop.permute.xlu0 %568 }
 0x104   :  { %v545_v57 = vmax.f32 %v333_v24, 0.0  ;;  %v565_v32 = vmax.f32 %v515_v25, 0.0 }
 0x105   :  { %v546_v34 = vmax.f32 %v335_v28, 0.0  ;;  %v562_v36 = vmax.f32 %v510_v29, 0.0  ;;  %v338_v37 = vpop.f32.mrb[20].mxu0  ;;  %1149 = vmatprep.subr.bf16.mxu0 %v1148_v53  ;;  %v65_v28 = vld [vmem:[%s1545_s5] sm:$0x1]  ;;  %v1201_v29 = vmov 0.0|0.0  }
 0x106   :  { %v1110_v38 = vpack.c.bf16 %v545_v57, %v542_v31  ;;  %v340_v39 = vpop.f32.mrb[21].mxu0  ;;  %1151 = vmatpush3.bf16.msra.mxu0 %v1148_v53  ;;  %v339_v41 = vadd.f32 %v338_v37, %v1461_v59  ;;  %v739_v31 = vlaneseq  ;;  %s1204_s5 = smov [#allocation3]  }
 0x107   :  { %v1108_v6 = vpack.c.bf16 %v546_v34, %v543_v33  ;;  %v1152_v40 = vpack.c.bf16 %v565_v32, %v562_v36  ;;  %v341_v54 = vadd.f32 %v340_v39, %v1461_v59  ;;  %v1203_v32 = vmov 1966171168   ;;  %v737_v36 = vpop.permute.xlu0 %736  ;;  %s926_s9 = sshll.u32 %s1204_s5, 4  ;;  %s927_s9 = int_to_ptr.vmem [resolvable:$true] %s926_s9 }
 0x108   :  { %v548_v45 = vmax.f32 %v339_v41, 0.0  ;;  %v740_v57 = vshrl.u32 %v739_v31, 7  ;;  %v893_v33 = vunpack.c.l.s4 %v1203_v32  ;;  %vm917_vm6 = vcmp.lt.s32.totalorder %v739_v31, 384  ;;  %s1174_s10 = scalar_lea.vmem %s927_s9, 48  ;;  %s1178_s11 = scalar_lea.vmem %s927_s9, 64 }
 0x109   :  { %v344_v58 = vpop.f32.mrb[22].mxu0  ;;  %1109 = vmatprep.subr.bf16.mxu1 %v1108_v6  ;;  %1153 = vmatprep.subr.bf16.mxu0 %v1152_v40  ;;  %v549_v47 = vmax.f32 %v341_v54, 0.0  ;;  %p1175_p0 = scmp.ne.s32.totalorder %s927_s9, %s1174_s10  ;;  %p1179_p1 = scmp.lt.s32.totalorder %s927_s9, %s927_s9 }
 0x10a   :  { %v345_v63 = vadd.f32 %v344_v58, %v1463_v60  ;;  %v346_v42 = vpop.f32.mrb[23].mxu0  ;;  %1111 = vmatpush1.bf16.msra.mxu1 %v1110_v38  ;;  %1155 = vmatpush3.bf16.msra.mxu0 %v1152_v40  ;;  %v741_v34 = vsub.s32 0, %v740_v57  ;;  %v894_v37 = vunpack.c.0.s8 %v893_v33  ;;  %p1180_p2 = scmp.lt.s32.totalorder %s1178_s11, %s1174_s10 }
 0x10b   :  { %v347_v44 = vadd.f32 %v346_v42, %v1463_v60 }
 0x10c   :  { %v551_v46 = vmax.f32 %v345_v63, 0.0  ;;  %v742_v38 = vrot.slane %v737_v36, %v741_v34  ;;  %v897_v41 = vsub.s32 %v894_v37, %v740_v57  ;;  %p1181_p3 = por %p1180_p2, %p1179_p1 }
 0x10d   :  { %v552_v49 = vmax.f32 %v347_v44, 0.0  ;;  %v350_v51 = vpop.f32.mrb[24].mxu0  ;;  %1071 = vmatmul.mubr.f32.vlgmr.msra.gmra.mrb[28].mxu0 %v62_v43 }
 0x10e   :  { %v1114_v59 = vpack.c.bf16 %v551_v46, %v548_v45  ;;  %v352_v0 = vpop.f32.mrb[25].mxu0  ;;  %v351_v2 = vadd.f32 %v350_v51, %v1465_v61  ;;  %p1182_p4 = pnand %p1181_p3, %p1175_p0 }
 0x10f   :  { %v1112_v1 = vpack.c.bf16 %v552_v49, %v549_v47  ;;  %v353_v3 = vadd.f32 %v352_v0, %v1465_v61  ;;  %v574_v61 = vpop.permute.xlu1 %573 }
 0x110   :  { %v554_v7 = vmax.f32 %v351_v2, 0.0 }
 0x111   :  { %v356_v4 = vpop.f32.mrb[26].mxu0  ;;  %1113 = vmatprep.subr.bf16.mxu1 %v1112_v1  ;;  %v555_v10 = vmax.f32 %v353_v3, 0.0 }
 0x112   :  { %v357_v5 = vadd.f32 %v356_v4, %v1467_v62  ;;  %v358_v55 = vpop.f32.mrb[27].mxu0  ;;  %1115 = vmatpush1.bf16.msra.mxu1 %v1114_v59 }
 0x113   :  { %v359_v60 = vadd.f32 %v358_v55, %v1467_v62 }
 0x114   :  { %v557_v9 = vmax.f32 %v357_v5, 0.0 }
 0x115   :  { %v558_v11 = vmax.f32 %v359_v60, 0.0 }
 0x116   :  { %v1118_v12 = vpack.c.bf16 %v557_v9, %v554_v7 }
 0x117   :  { %v1116_v13 = vpack.c.bf16 %v558_v11, %v555_v10 }
 0x119   :  { %1117 = vmatprep.subr.bf16.mxu1 %v1116_v13 }
 0x11a   :  { %1119 = vmatpush1.bf16.msra.mxu1 %v1118_v12 }
 0x11b   :  { %1121 = vmatprep.subr.bf16.mxu1 %v1479_v35 }
 0x11e   :  { %1123 = vmatpush1.bf16.msra.mxu1 %v1477_v30 }
 0x121   :  { %641 = vmatmul.mubr.f32.vlgmr.msra.gmra.mrb[20].mxu1 %v1444_v48 }
 0x122   :  { %646 = vmatprep.mubr.f32.mxu1 %v1199_v8 }
 0x125   :  { %647 = vmatmul.mubr.f32.gmra.mrb[22].mxu1 %v62_v43 }
 0x126   :  { %811 = vmatprep.mubr.f32.mxu1 %v1199_v8 }
 0x1e0   :  { %v1072_v62 = vpop.f32.mrb[28].mxu0 }
 0x1e1   :  { %v725_v52 = vadd.f32 %v1072_v62, %v574_v61  ;;  %v719_v50 = vpop.f32.mrb[29].mxu0 }
 0x1e2   :  { %v720_v15 = vadd.f32 %v719_v50, %v569_v14 }
 0x1e3   :  { %v733_v16 = vmax.f32 %v725_v52, 0.0 }
 0x1e4   :  { %v730_v17 = vmax.f32 %v720_v15, 0.0 }
 0x1e6   :  { %v1161_v56 = vpack.c.bf16 %v733_v16, %v730_v17 }
 0x1f4   :  { %v642_v18 = vpop.f32.mrb[20].mxu1 }
 0x1f5   :  { %v644_v35 = vpop.f32.mrb[21].mxu1  ;;  %v643_v19 = vadd.f32 %v642_v18, %v569_v14 }
 0x1f6   :  { %v645_v30 = vadd.f32 %v644_v35, %v569_v14 }
 0x1f7   :  { %v728_v23 = vmax.f32 %v643_v19, 0.0 }
 0x1f8   :  { %v648_v20 = vpop.f32.mrb[22].mxu1  ;;  %v729_v25 = vmax.f32 %v645_v30, 0.0 }
 0x1f9   :  { %v649_v48 = vadd.f32 %v648_v20, %v574_v61  ;;  %v650_v21 = vpop.f32.mrb[23].mxu1 }
 0x1fa   :  { %v651_v22 = vadd.f32 %v650_v21, %v574_v61 }
 0x1fb   :  { %v731_v24 = vmax.f32 %v649_v48, 0.0 }
 0x1fc   :  { %v732_v26 = vmax.f32 %v651_v22, 0.0 }
 0x1fd   :  { %v1158_v27 = vpack.c.bf16 %v731_v24, %v728_v23 }
 0x1fe   :  { %v1156_v53 = vpack.c.bf16 %v732_v26, %v729_v25 }
 0x200   :  { %1157 = vmatprep.subr.bf16.mxu1 %v1156_v53 }
 0x201   :  { %1159 = vmatpush1.bf16.msra.mxu1 %v1158_v27 }
 0x202   :  { %1160 = vmatprep.subr.bf16.mxu1 %v1201_v29 }
 0x204   :  { %969 = vmatmul.mubr.msk.f32.vlgmr.msra.gmra.mrb[24].mxu1 %vm743_vm4, %v65_v28 }
 0x205   :  { %1162 = vmatpush3.bf16.msra.mxu1 %v1161_v56  ;;  %1077 = vmatprep.mubr.msk.f32.mxu1 %vm1202_vm5, %v1199_v8 }
 0x208   :  { %1078 = vmatmul.mubr.msk.f32.vlgmr.msra.gmra.mrb[26].mxu1 %vm743_vm4, %v65_v28 }
 0x2d7   :  { %v813_v39 = vpop.f32.mrb[24].mxu1 }
 0x2d8   :  { %v814_v6 = vadd.f32 %v813_v39, %v742_v38  ;;  %v815_v40 = vpop.f32.mrb[25].mxu1 }
 0x2d9   :  { %v816_v54 = vadd.f32 %v815_v40, %v742_v38 }
 0x2db   :  { %v891_v58 = vcombine.low %v814_v6, %v816_v54  ;;  %v884_v63 = vpop.f32.mrb[26].mxu1 }
 0x2dc   :  { %v885_v42 = vadd.f32 %v884_v63, %v742_v38  ;;  %v1079_v43 = vpop.f32.mrb[27].mxu1 }
 0x2dd   :  { %v898_v44 = vrot.slane %v891_v58, %v897_v41 }
 0x2de   :  { %v905_v8 = vrot.slane %v885_v42, %v897_v41 }
 0x2e0   :  { %v906_v45 = vcombine.low %v898_v44, %v905_v8 }
 0x2e2   :  { %v913_v46 = vrot.slane %v906_v45, %v897_v41 }
 0x2e4   :  { %919 = vst.msk [vmem:[#allocation3] sm:$0x7] %vm917_vm6, %v913_v46 }
 0x2e5   :  { %1185 = shalt.err (!%p1182_p4)
}
 0x2e6   :  { %s1186_s14 = scalar_lea.hbm %s1547_s7, 48 }
 0x2e7   :  { %p1187_p5 = scmp.ne.s32.totalorder %s1547_s7, %s1186_s14  ;;  %p1190_p6 = scmp.lt.u32.totalorder %s1186_s14, %s1547_s7 }
 0x2e9   :  { %p1192_p7 = pnand %p1190_p6, %p1187_p5 }
 0x2eb   :  { %1195 = shalt.err (!%p1192_p7)
}
 0x2ec   :  { %929 = dma.vmem_to_hbm [thread:$0]  %s927_s9, 48, %s1547_s7, [#allocation4]  }
 0x2ed   :  { %1196 = dma.done.wait [#allocation4], 48  }
 0x2ee   :  { %1197 = vsyncadd [#allocation4], 4294967248 }
 0x2ef   :  { %933 = vsyncpa [#allocation4], 1 }

</bundles_post_ra>
